<compile_context>
chip_gen: v6e
topology: v6e:2x2x1
jax: 0.10.0
libtpu: 0.0.40
codegen_flags: <defaults>
</compile_context>

<pallas_src>
import numpy as np
import jax
import jax.numpy as jnp
from jax import lax
from jax.experimental import pallas as pl
from jax.experimental.pallas import tpu as pltpu

_EPS = 1e-5


def _toeplitz_weight(w_oihw, width):
    """Repack an OIHW 3x3 kernel into a (3*W*Cin, W*Cout) row-Toeplitz weight.

    B[dy*W*Cin + wp*Cin + ci, w*Cout + co] = w[co, ci, dy, wp - w + 1]
    whenever 0 <= wp - w + 1 <= 2, else 0.  Multiplying the lane-concatenated
    [row-1 | row | row+1] slab of shape (N*H, 3*W*Cin) by B realises the 3x3
    conv; zero-padding along W is folded into the (static) weight.
    """
    cout, cin, kh, kw = w_oihw.shape
    assert kh == 3 and kw == 3
    pos = np.arange(width)
    # sel[dx, w, wp] = 1  iff  wp == w + dx - 1   (static selector)
    sel = (pos[None, None, :] ==
           pos[None, :, None] + np.arange(3)[:, None, None] - 1).astype(np.float32)
    b = jnp.einsum('dwp,oiyd->ypiwo', sel, w_oihw.astype(jnp.float32))
    return b.reshape(3 * width * cin, width * cout)


def _make_kernel(n, h, w, c):
    wc = w * c
    rows = n * h
    inv_count = 1.0 / float(n * h * w)      # samples per channel for batch stats

    def bn_scale_shift(acc, gamma_l, beta_l):
        """One-pass training-mode BN stats on a lane-dense (N*H, W*C) activation.

        Returns lane-tiled (1, W*C) scale / shift so the BN apply is one FMA.
        The per-channel fold over the W lane groups uses log2(W) XLU lane
        rotations (exact, no reshape / relayout).
        """
        s1 = jnp.sum(acc, axis=0, keepdims=True)           # (1, W*C)
        s2 = jnp.sum(acc * acc, axis=0, keepdims=True)     # (1, W*C)
        amt = c
        while amt < wc:
            s1 = s1 + pltpu.roll(s1, shift=amt, axis=1)
            s2 = s2 + pltpu.roll(s2, shift=amt, axis=1)
            amt *= 2
        mu = s1 * inv_count
        var = s2 * inv_count - mu * mu                     # biased variance
        scale = gamma_l * lax.rsqrt(var + _EPS)
        return scale, beta_l - mu * scale

    def kernel(x_ref, b1_ref, g1_ref, be1_ref, b2_ref, g2_ref, be2_ref, out_ref):
        x = x_ref[...]                                     # (N*H, W*C) f32

        # Batch-edge row masks: row r has no r-1 tap at the top of a sample and
        # no r+1 tap at the bottom.  Computed once, reused by both convs.
        row = lax.broadcasted_iota(jnp.int32, (rows, wc), 0)
        top = (row % h) == 0
        bot = (row % h) == (h - 1)

        def conv3x3(a, b_ref_):
            """3x3 conv as ONE K=3*W*C MXU matmul (bf16 operands, f32 acc)."""
            up = jnp.where(top, 0.0, pltpu.roll(a, shift=1, axis=0))        # row r-1
            dn = jnp.where(bot, 0.0, pltpu.roll(a, shift=rows - 1, axis=0))  # row r+1
            lhs = jnp.concatenate([up, a, dn], axis=1).astype(jnp.bfloat16)  # (rows, 3*wc)
            return jnp.dot(lhs, b_ref_[...], preferred_element_type=jnp.float32)

        # ---- conv1 -> BN1 (batch stats) -> ReLU -----------------------------
        acc1 = conv3x3(x, b1_ref)
        sc1, sh1 = bn_scale_shift(acc1, g1_ref[...], be1_ref[...])
        y1 = jnp.maximum(acc1 * sc1 + sh1, 0.0)

        # ---- conv2 -> BN2 -> + identity residual -> ReLU --------------------
        acc2 = conv3x3(y1, b2_ref)
        sc2, sh2 = bn_scale_shift(acc2, g2_ref[...], be2_ref[...])
        out_ref[...] = jnp.maximum(acc2 * sc2 + sh2 + x, 0.0)

    return kernel


def residual_block(x_nchw, w1_oihw, g1, b1, w2_oihw, g2, b2):
    """Forward pass of ResidualBlock(C, C) on NCHW input; returns NCHW output."""
    n, cin, h, w = x_nchw.shape
    cout = w1_oihw.shape[0]
    assert cin == cout, "identity shortcut requires inchannel == outchannel"
    assert (w & (w - 1)) == 0, "lane-group BN fold assumes W is a power of two"
    c = cout
    wc = w * c
    rows = n * h

    # glue: NCHW -> lane-dense (N*H, W*C); OIHW -> (3*W*Cin, W*Cout) Toeplitz
    # weights in bf16; gamma/beta pre-tiled to the (1, W*C) lane layout.
    # TODO(synk): in a full ResNet keep activations lane-dense across blocks so
    # these wrapper transposes (HBM round-trips at real sizes) disappear.
    x = jnp.transpose(x_nchw, (0, 2, 3, 1)).reshape(rows, wc).astype(jnp.float32)
    bw1 = _toeplitz_weight(w1_oihw, w).astype(jnp.bfloat16)
    bw2 = _toeplitz_weight(w2_oihw, w).astype(jnp.bfloat16)
    tile = lambda v: jnp.tile(v.astype(jnp.float32).reshape(1, c), (1, w))
    g1_l, b1_l, g2_l, b2_l = tile(g1), tile(b1), tile(g2), tile(b2)

    # VMEM budget derived from the actual working set (I/O, bf16 Toeplitz
    # weights, bf16 LHS slabs, f32 intermediates) x2 safety + compiler headroom.
    footprint = (
        2 * rows * wc * 4            # x + out (f32)
        + 2 * 3 * wc * wc * 2        # two bf16 Toeplitz weights
        + 4 * wc * 4                 # gamma/beta lane tiles
        + 2 * rows * 3 * wc * 2      # bf16 LHS slabs
        + 6 * rows * wc * 4          # f32 intermediates (rolls, acc1, y1, acc2)
    )
    vmem_limit = int(2 * footprint + (4 << 20))

    vmem = pl.BlockSpec(memory_space=pltpu.MemorySpace.VMEM)
    out = pl.pallas_call(
        _make_kernel(n, h, w, c),
        out_shape=jax.ShapeDtypeStruct((rows, wc), jnp.float32),
        in_specs=[vmem] * 7,
        out_specs=vmem,
        compiler_params=pltpu.CompilerParams(vmem_limit_bytes=vmem_limit),
    )(x, bw1, g1_l, b1_l, bw2, g2_l, b2_l)

    return jnp.transpose(out.reshape(n, h, w, c), (0, 3, 1, 2))


def reference(x, w1, g1, b1, w2, g2, b2):
    """Pure-JAX reference mirroring the PyTorch forward (training-mode BN)."""
    def conv(a, wt):
        return lax.conv_general_dilated(
            a, wt, window_strides=(1, 1), padding=((1, 1), (1, 1)),
            dimension_numbers=('NCHW', 'OIHW', 'NCHW'),
            precision=lax.Precision.HIGHEST)

    def bn(a, g, b):
        mu = a.mean(axis=(0, 2, 3), keepdims=True)
        var = ((a - mu) ** 2).mean(axis=(0, 2, 3), keepdims=True)
        return (a - mu) * lax.rsqrt(var + _EPS) * g.reshape(1, -1, 1, 1) \
               + b.reshape(1, -1, 1, 1)

    out = conv(x, w1)
    out = jnp.maximum(bn(out, g1, b1), 0.0)
    out = conv(out, w2)
    out = bn(out, g2, b2)
    return jnp.maximum(out + x, 0.0)


if __name__ == "__main__":
    N, C, H, W = 2, 8, 16, 16    # W*C = 128 -> exactly one lane tile wide

    key = jax.random.PRNGKey(0)
    kx, k1, k2, k3, k4, k5, k6 = jax.random.split(key, 7)
    x = jax.random.normal(kx, (N, C, H, W), jnp.float32)
    w1 = 0.1 * jax.random.normal(k1, (C, C, 3, 3), jnp.float32)   # OIHW, bias=False
    w2 = 0.1 * jax.random.normal(k2, (C, C, 3, 3), jnp.float32)
    g1 = 1.0 + 0.1 * jax.random.normal(k3, (C,), jnp.float32)     # BN1 gamma/beta
    b1 = 0.1 * jax.random.normal(k4, (C,), jnp.float32)
    g2 = 1.0 + 0.1 * jax.random.normal(k5, (C,), jnp.float32)     # BN2 gamma/beta
    b2 = 0.1 * jax.random.normal(k6, (C,), jnp.float32)

    out = jax.block_until_ready(residual_block(x, w1, g1, b1, w2, g2, b2))
    ref = jax.block_until_ready(reference(x, w1, g1, b1, w2, g2, b2))

    # bf16 MXU operands vs. a float32 HIGHEST-precision reference: expected
    # absolute error ~1e-2 on O(1) outputs after two convs + two BNs; any
    # structural mistake (taps / halo masks / BN / residual) would be O(1), so
    # this tolerance still validates structure.
    np.testing.assert_allclose(np.asarray(out), np.asarray(ref),
                               rtol=5e-2, atol=5e-2)
    print("KERNEL_OK")
</pallas_src>

<mosaic_0001>
module attributes {stable_mosaic.version = 11 : i64} {
  func.func @kernel(%arg0: memref<32x128xf32, #tpu.memory_space<vmem>>, %arg1: memref<384x128xbf16, #tpu.memory_space<vmem>>, %arg2: memref<1x128xf32, #tpu.memory_space<vmem>>, %arg3: memref<1x128xf32, #tpu.memory_space<vmem>>, %arg4: memref<384x128xbf16, #tpu.memory_space<vmem>>, %arg5: memref<1x128xf32, #tpu.memory_space<vmem>>, %arg6: memref<1x128xf32, #tpu.memory_space<vmem>>, %arg7: memref<32x128xf32, #tpu.memory_space<vmem>>) attributes {dimension_semantics = [], scalar_prefetch = 0 : i64, scratch_operands = 0 : i64, tpu.core_type = #tpu.core_type<tc>} {
    %c0 = arith.constant 0 : index
    %c0_0 = arith.constant 0 : index
    %0 = vector.load %arg0[%c0, %c0_0] : memref<32x128xf32, #tpu.memory_space<vmem>>, vector<32x128xf32>
    %1 = tpu.iota {dimensions = array<i32: 0>} : vector<32x128xi32>
    %c16_i32 = arith.constant 16 : i32
    %c0_i32 = arith.constant 0 : i32
    %2 = arith.cmpi eq, %c16_i32, %c0_i32 : i32
    %c1_i32 = arith.constant 1 : i32
    %3 = arith.select %2, %c1_i32, %c16_i32 : i32
    %4 = vector.broadcast %3 : i32 to vector<32x128xi32>
    %5 = arith.remsi %1, %4 : vector<32x128xi32>
    %c0_i32_1 = arith.constant 0 : i32
    %6 = vector.broadcast %c0_i32_1 : i32 to vector<32x128xi32>
    %7 = arith.cmpi ne, %5, %6 : vector<32x128xi32>
    %c0_i32_2 = arith.constant 0 : i32
    %8 = vector.broadcast %c0_i32_2 : i32 to vector<32x128xi32>
    %9 = arith.cmpi slt, %5, %8 : vector<32x128xi32>
    %c0_i32_3 = arith.constant 0 : i32
    %10 = arith.cmpi slt, %3, %c0_i32_3 : i32
    %11 = vector.broadcast %10 : i1 to vector<32x128xi1>
    %12 = vector.broadcast %11 : vector<32x128xi1> to vector<32x128xi1>
    %13 = arith.xori %9, %12 : vector<32x128xi1>
    %14 = arith.andi %13, %7 : vector<32x128xi1>
    %15 = vector.broadcast %3 : i32 to vector<32x128xi32>
    %16 = arith.addi %5, %15 : vector<32x128xi32>
    %17 = arith.select %14, %16, %5 : vector<32x128xi1>, vector<32x128xi32>
    %c0_i32_4 = arith.constant 0 : i32
    %18 = vector.broadcast %c0_i32_4 : i32 to vector<32x128xi32>
    %19 = arith.cmpi eq, %17, %18 : vector<32x128xi32>
    %c16_i32_5 = arith.constant 16 : i32
    %c0_i32_6 = arith.constant 0 : i32
    %20 = arith.cmpi eq, %c16_i32_5, %c0_i32_6 : i32
    %c1_i32_7 = arith.constant 1 : i32
    %21 = arith.select %20, %c1_i32_7, %c16_i32_5 : i32
    %22 = vector.broadcast %21 : i32 to vector<32x128xi32>
    %23 = arith.remsi %1, %22 : vector<32x128xi32>
    %c0_i32_8 = arith.constant 0 : i32
    %24 = vector.broadcast %c0_i32_8 : i32 to vector<32x128xi32>
    %25 = arith.cmpi ne, %23, %24 : vector<32x128xi32>
    %c0_i32_9 = arith.constant 0 : i32
    %26 = vector.broadcast %c0_i32_9 : i32 to vector<32x128xi32>
    %27 = arith.cmpi slt, %23, %26 : vector<32x128xi32>
    %c0_i32_10 = arith.constant 0 : i32
    %28 = arith.cmpi slt, %21, %c0_i32_10 : i32
    %29 = vector.broadcast %28 : i1 to vector<32x128xi1>
    %30 = vector.broadcast %29 : vector<32x128xi1> to vector<32x128xi1>
    %31 = arith.xori %27, %30 : vector<32x128xi1>
    %32 = arith.andi %31, %25 : vector<32x128xi1>
    %33 = vector.broadcast %21 : i32 to vector<32x128xi32>
    %34 = arith.addi %23, %33 : vector<32x128xi32>
    %35 = arith.select %32, %34, %23 : vector<32x128xi1>, vector<32x128xi32>
    %c15_i32 = arith.constant 15 : i32
    %36 = vector.broadcast %c15_i32 : i32 to vector<32x128xi32>
    %37 = arith.cmpi eq, %35, %36 : vector<32x128xi32>
    %c1_i32_11 = arith.constant 1 : i32
    %38 = tpu.dynamic_rotate %0 by %c1_i32_11 dim 0 : vector<32x128xf32>, i32 -> vector<32x128xf32>
    %cst = arith.constant 0.000000e+00 : f32
    %39 = vector.broadcast %cst : f32 to vector<32x128xf32>
    %40 = arith.select %19, %39, %38 : vector<32x128xi1>, vector<32x128xf32>
    %c31_i32 = arith.constant 31 : i32
    %41 = tpu.dynamic_rotate %0 by %c31_i32 dim 0 : vector<32x128xf32>, i32 -> vector<32x128xf32>
    %cst_12 = arith.constant 0.000000e+00 : f32
    %42 = vector.broadcast %cst_12 : f32 to vector<32x128xf32>
    %43 = arith.select %37, %42, %41 : vector<32x128xi1>, vector<32x128xf32>
    %44 = tpu.concatenate %40, %0, %43 in 1 : vector<32x128xf32>, vector<32x128xf32>, vector<32x128xf32> -> vector<32x384xf32>
    %45 = arith.truncf %44 : vector<32x384xf32> to vector<32x384xbf16>
    %c0_13 = arith.constant 0 : index
    %c0_14 = arith.constant 0 : index
    %46 = vector.load %arg1[%c0_13, %c0_14] : memref<384x128xbf16, #tpu.memory_space<vmem>>, vector<384x128xbf16>
    %cst_15 = arith.constant dense<0.000000e+00> : vector<32x128xf32>
    %47 = tpu.matmul %45, %46, %cst_15 {dimension_numbers = #tpu.dot_dimension_numbers<[1], [0], [0], [1], [0, 0, 1, 1], [], []>} : vector<32x384xbf16>, vector<384x128xbf16>, vector<32x128xf32> -> vector<32x128xf32>
    %c0_16 = arith.constant 0 : index
    %c0_17 = arith.constant 0 : index
    %48 = vector.load %arg2[%c0_16, %c0_17] : memref<1x128xf32, #tpu.memory_space<vmem>>, vector<1x128xf32>
    %c0_18 = arith.constant 0 : index
    %c0_19 = arith.constant 0 : index
    %49 = vector.load %arg3[%c0_18, %c0_19] : memref<1x128xf32, #tpu.memory_space<vmem>>, vector<1x128xf32>
    %cst_20 = arith.constant dense<0.000000e+00> : vector<128xf32>
    %50 = vector.multi_reduction <add>, %47, %cst_20 [0] : vector<32x128xf32> to vector<128xf32>
    %51 = vector.shape_cast %50 : vector<128xf32> to vector<1x128xf32>
    %52 = arith.mulf %47, %47 : vector<32x128xf32>
    %cst_21 = arith.constant dense<0.000000e+00> : vector<128xf32>
    %53 = vector.multi_reduction <add>, %52, %cst_21 [0] : vector<32x128xf32> to vector<128xf32>
    %54 = vector.shape_cast %53 : vector<128xf32> to vector<1x128xf32>
    %c8_i32 = arith.constant 8 : i32
    %55 = tpu.dynamic_rotate %51 by %c8_i32 dim 1 : vector<1x128xf32>, i32 -> vector<1x128xf32>
    %56 = arith.addf %51, %55 : vector<1x128xf32>
    %c8_i32_22 = arith.constant 8 : i32
    %57 = tpu.dynamic_rotate %54 by %c8_i32_22 dim 1 : vector<1x128xf32>, i32 -> vector<1x128xf32>
    %58 = arith.addf %54, %57 : vector<1x128xf32>
    %c16_i32_23 = arith.constant 16 : i32
    %59 = tpu.dynamic_rotate %56 by %c16_i32_23 dim 1 : vector<1x128xf32>, i32 -> vector<1x128xf32>
    %60 = arith.addf %56, %59 : vector<1x128xf32>
    %c16_i32_24 = arith.constant 16 : i32
    %61 = tpu.dynamic_rotate %58 by %c16_i32_24 dim 1 : vector<1x128xf32>, i32 -> vector<1x128xf32>
    %62 = arith.addf %58, %61 : vector<1x128xf32>
    %c32_i32 = arith.constant 32 : i32
    %63 = tpu.dynamic_rotate %60 by %c32_i32 dim 1 : vector<1x128xf32>, i32 -> vector<1x128xf32>
    %64 = arith.addf %60, %63 : vector<1x128xf32>
    %c32_i32_25 = arith.constant 32 : i32
    %65 = tpu.dynamic_rotate %62 by %c32_i32_25 dim 1 : vector<1x128xf32>, i32 -> vector<1x128xf32>
    %66 = arith.addf %62, %65 : vector<1x128xf32>
    %c64_i32 = arith.constant 64 : i32
    %67 = tpu.dynamic_rotate %64 by %c64_i32 dim 1 : vector<1x128xf32>, i32 -> vector<1x128xf32>
    %68 = arith.addf %64, %67 : vector<1x128xf32>
    %c64_i32_26 = arith.constant 64 : i32
    %69 = tpu.dynamic_rotate %66 by %c64_i32_26 dim 1 : vector<1x128xf32>, i32 -> vector<1x128xf32>
    %70 = arith.addf %66, %69 : vector<1x128xf32>
    %cst_27 = arith.constant 0.001953125 : f32
    %71 = vector.broadcast %cst_27 : f32 to vector<1x128xf32>
    %72 = arith.mulf %68, %71 : vector<1x128xf32>
    %cst_28 = arith.constant 0.001953125 : f32
    %73 = vector.broadcast %cst_28 : f32 to vector<1x128xf32>
    %74 = arith.mulf %70, %73 : vector<1x128xf32>
    %75 = arith.mulf %72, %72 : vector<1x128xf32>
    %76 = arith.subf %74, %75 : vector<1x128xf32>
    %cst_29 = arith.constant 9.99999974E-6 : f32
    %77 = vector.broadcast %cst_29 : f32 to vector<1x128xf32>
    %78 = arith.addf %76, %77 : vector<1x128xf32>
    %79 = math.rsqrt %78 : vector<1x128xf32>
    %80 = arith.mulf %48, %79 : vector<1x128xf32>
    %81 = arith.mulf %72, %80 : vector<1x128xf32>
    %82 = arith.subf %49, %81 : vector<1x128xf32>
    %83 = vector.broadcast %80 : vector<1x128xf32> to vector<32x128xf32>
    %84 = arith.mulf %47, %83 : vector<32x128xf32>
    %85 = vector.broadcast %82 : vector<1x128xf32> to vector<32x128xf32>
    %86 = arith.addf %84, %85 : vector<32x128xf32>
    %cst_30 = arith.constant 0.000000e+00 : f32
    %87 = vector.broadcast %cst_30 : f32 to vector<32x128xf32>
    %88 = arith.maximumf %86, %87 : vector<32x128xf32>
    %c1_i32_31 = arith.constant 1 : i32
    %89 = tpu.dynamic_rotate %88 by %c1_i32_31 dim 0 : vector<32x128xf32>, i32 -> vector<32x128xf32>
    %cst_32 = arith.constant 0.000000e+00 : f32
    %90 = vector.broadcast %cst_32 : f32 to vector<32x128xf32>
    %91 = arith.select %19, %90, %89 : vector<32x128xi1>, vector<32x128xf32>
    %c31_i32_33 = arith.constant 31 : i32
    %92 = tpu.dynamic_rotate %88 by %c31_i32_33 dim 0 : vector<32x128xf32>, i32 -> vector<32x128xf32>
    %cst_34 = arith.constant 0.000000e+00 : f32
    %93 = vector.broadcast %cst_34 : f32 to vector<32x128xf32>
    %94 = arith.select %37, %93, %92 : vector<32x128xi1>, vector<32x128xf32>
    %95 = tpu.concatenate %91, %88, %94 in 1 : vector<32x128xf32>, vector<32x128xf32>, vector<32x128xf32> -> vector<32x384xf32>
    %96 = arith.truncf %95 : vector<32x384xf32> to vector<32x384xbf16>
    %c0_35 = arith.constant 0 : index
    %c0_36 = arith.constant 0 : index
    %97 = vector.load %arg4[%c0_35, %c0_36] : memref<384x128xbf16, #tpu.memory_space<vmem>>, vector<384x128xbf16>
    %cst_37 = arith.constant dense<0.000000e+00> : vector<32x128xf32>
    %98 = tpu.matmul %96, %97, %cst_37 {dimension_numbers = #tpu.dot_dimension_numbers<[1], [0], [0], [1], [0, 0, 1, 1], [], []>} : vector<32x384xbf16>, vector<384x128xbf16>, vector<32x128xf32> -> vector<32x128xf32>
    %c0_38 = arith.constant 0 : index
    %c0_39 = arith.constant 0 : index
    %99 = vector.load %arg5[%c0_38, %c0_39] : memref<1x128xf32, #tpu.memory_space<vmem>>, vector<1x128xf32>
    %c0_40 = arith.constant 0 : index
    %c0_41 = arith.constant 0 : index
    %100 = vector.load %arg6[%c0_40, %c0_41] : memref<1x128xf32, #tpu.memory_space<vmem>>, vector<1x128xf32>
    %cst_42 = arith.constant dense<0.000000e+00> : vector<128xf32>
    %101 = vector.multi_reduction <add>, %98, %cst_42 [0] : vector<32x128xf32> to vector<128xf32>
    %102 = vector.shape_cast %101 : vector<128xf32> to vector<1x128xf32>
    %103 = arith.mulf %98, %98 : vector<32x128xf32>
    %cst_43 = arith.constant dense<0.000000e+00> : vector<128xf32>
    %104 = vector.multi_reduction <add>, %103, %cst_43 [0] : vector<32x128xf32> to vector<128xf32>
    %105 = vector.shape_cast %104 : vector<128xf32> to vector<1x128xf32>
    %c8_i32_44 = arith.constant 8 : i32
    %106 = tpu.dynamic_rotate %102 by %c8_i32_44 dim 1 : vector<1x128xf32>, i32 -> vector<1x128xf32>
    %107 = arith.addf %102, %106 : vector<1x128xf32>
    %c8_i32_45 = arith.constant 8 : i32
    %108 = tpu.dynamic_rotate %105 by %c8_i32_45 dim 1 : vector<1x128xf32>, i32 -> vector<1x128xf32>
    %109 = arith.addf %105, %108 : vector<1x128xf32>
    %c16_i32_46 = arith.constant 16 : i32
    %110 = tpu.dynamic_rotate %107 by %c16_i32_46 dim 1 : vector<1x128xf32>, i32 -> vector<1x128xf32>
    %111 = arith.addf %107, %110 : vector<1x128xf32>
    %c16_i32_47 = arith.constant 16 : i32
    %112 = tpu.dynamic_rotate %109 by %c16_i32_47 dim 1 : vector<1x128xf32>, i32 -> vector<1x128xf32>
    %113 = arith.addf %109, %112 : vector<1x128xf32>
    %c32_i32_48 = arith.constant 32 : i32
    %114 = tpu.dynamic_rotate %111 by %c32_i32_48 dim 1 : vector<1x128xf32>, i32 -> vector<1x128xf32>
    %115 = arith.addf %111, %114 : vector<1x128xf32>
    %c32_i32_49 = arith.constant 32 : i32
    %116 = tpu.dynamic_rotate %113 by %c32_i32_49 dim 1 : vector<1x128xf32>, i32 -> vector<1x128xf32>
    %117 = arith.addf %113, %116 : vector<1x128xf32>
    %c64_i32_50 = arith.constant 64 : i32
    %118 = tpu.dynamic_rotate %115 by %c64_i32_50 dim 1 : vector<1x128xf32>, i32 -> vector<1x128xf32>
    %119 = arith.addf %115, %118 : vector<1x128xf32>
    %c64_i32_51 = arith.constant 64 : i32
    %120 = tpu.dynamic_rotate %117 by %c64_i32_51 dim 1 : vector<1x128xf32>, i32 -> vector<1x128xf32>
    %121 = arith.addf %117, %120 : vector<1x128xf32>
    %cst_52 = arith.constant 0.001953125 : f32
    %122 = vector.broadcast %cst_52 : f32 to vector<1x128xf32>
    %123 = arith.mulf %119, %122 : vector<1x128xf32>
    %cst_53 = arith.constant 0.001953125 : f32
    %124 = vector.broadcast %cst_53 : f32 to vector<1x128xf32>
    %125 = arith.mulf %121, %124 : vector<1x128xf32>
    %126 = arith.mulf %123, %123 : vector<1x128xf32>
    %127 = arith.subf %125, %126 : vector<1x128xf32>
    %cst_54 = arith.constant 9.99999974E-6 : f32
    %128 = vector.broadcast %cst_54 : f32 to vector<1x128xf32>
    %129 = arith.addf %127, %128 : vector<1x128xf32>
    %130 = math.rsqrt %129 : vector<1x128xf32>
    %131 = arith.mulf %99, %130 : vector<1x128xf32>
    %132 = arith.mulf %123, %131 : vector<1x128xf32>
    %133 = arith.subf %100, %132 : vector<1x128xf32>
    %134 = vector.broadcast %131 : vector<1x128xf32> to vector<32x128xf32>
    %135 = arith.mulf %98, %134 : vector<32x128xf32>
    %136 = vector.broadcast %133 : vector<1x128xf32> to vector<32x128xf32>
    %137 = arith.addf %135, %136 : vector<32x128xf32>
    %138 = arith.addf %137, %0 : vector<32x128xf32>
    %cst_55 = arith.constant 0.000000e+00 : f32
    %139 = vector.broadcast %cst_55 : f32 to vector<32x128xf32>
    %140 = arith.maximumf %138, %139 : vector<32x128xf32>
    %c0_56 = arith.constant 0 : index
    %c0_57 = arith.constant 0 : index
    %141 = vector.load %arg7[%c0_56, %c0_57] : memref<32x128xf32, #tpu.memory_space<vmem>>, vector<32x128xf32>
    tpu.vector_store %arg7[%c0_56, %c0_57], %140 {strides = array<i32>} : memref<32x128xf32, #tpu.memory_space<vmem>>, vector<32x128xf32>,
    return
  }
}

</mosaic_0001>

<bundles_post_ra>
// kernel: tpu_custom_call.1
= control target key start
LH: loop header
LB: loop body
LE: loop exit
PB: predicated region body
PF: predicated region fallthrough
CT: control target
= control target key end

     0   :  { %12 = vsyncpa [#allocation3], 0  ;;  %s1587_s0 = inlined_call_operand.hbm [shape: f32[32,128], index: 0, kind: input, shape index: {}]   ;;  %s1588_s1 = inlined_call_operand.hbm [shape: bf16[384,128], index: 1, kind: input, shape index: {}]   ;;  %s1589_s2 = inlined_call_operand.vmem [shape: f32[1,128], index: 2, kind: input, shape index: {}]   ;;  %s1590_s3 = inlined_call_operand.vmem [shape: f32[1,128], index: 3, kind: input, shape index: {}]   ;;  %s1591_s4 = inlined_call_operand.hbm [shape: bf16[384,128], index: 4, kind: input, shape index: {}]   ;;  %s1592_s5 = inlined_call_operand.vmem [shape: f32[1,128], index: 5, kind: input, shape index: {}]   ;;  %s1593_s6 = inlined_call_operand.vmem [shape: f32[1,128], index: 6, kind: input, shape index: {}]   ;;  %s1594_s7 = inlined_call_operand.hbm [shape: f32[32,128], index: 7, kind: output, shape index: {}]  }
   0x1   :  { %13 = vsyncpa [#allocation6], 0 }
   0x2   :  { %14 = vsyncpa [#allocation4], 0  ;;  %s1313_s24 = smov [#allocation5]  }
   0x3   :  { %s32_s25 = sshll.u32 %s1313_s24, 4  ;;  %s33_s25 = int_to_ptr.vmem [resolvable:$true] %s32_s25 }
   0x4   :  { %s1235_s26 = scalar_lea.vmem %s33_s25, 3072  ;;  %p1240_p1 = scmp.lt.s32.totalorder %s33_s25, %s33_s25 }
   0x5   :  { %p1236_p0 = scmp.ne.s32.totalorder %s33_s25, %s1235_s26  ;;  %p1241_p2 = scmp.lt.s32.totalorder %s1235_s26, %s1235_s26 }
   0x7   :  { %p1242_p3 = por %p1241_p2, %p1240_p1 }
   0x9   :  { %p1243_p4 = pnand %p1242_p3, %p1236_p0 }
   0xb   :  { %1246 = shalt.err (!%p1243_p4)
}
   0xc   :  { %s1314_s27 = smov 64   ;;  %s1315_s28 = smov 4  }
   0xd   :  { %38 = dma.hbm_to_vmem [thread:$0]  %s1588_s1, 3072, %s33_s25, [#allocation6], %s1314_s27, %s1314_s27, %s1315_s28  }
   0xe   :  { %s1316_s8 = smov [#allocation2]  }
   0xf   :  { %s20_s9 = sshll.u32 %s1316_s8, 4  ;;  %s21_s9 = int_to_ptr.vmem [resolvable:$true] %s20_s9 }
  0x10   :  { %s1255_s10 = scalar_lea.vmem %s21_s9, 512  ;;  %p1260_p6 = scmp.lt.s32.totalorder %s21_s9, %s21_s9 }
  0x11   :  { %p1256_p5 = scmp.ne.s32.totalorder %s21_s9, %s1255_s10  ;;  %p1261_p7 = scmp.lt.s32.totalorder %s1255_s10, %s1255_s10 }
  0x13   :  { %p1262_p8 = por %p1261_p7, %p1260_p6 }
  0x15   :  { %p1263_p9 = pnand %p1262_p8, %p1256_p5 }
  0x17   :  { %1266 = shalt.err (!%p1263_p9)
}
  0x18   :  { %s1317_s11 = smov 128   ;;  %s1318_s12 = smov 8  }
  0x19   :  { %26 = dma.hbm_to_vmem [thread:$0]  %s1587_s0, 512, %s21_s9, [#allocation3], %s1317_s11, %s1317_s11, %s1318_s12  }
  0x1a   :  { %s1319_s1 = smov [#allocation7]  }
  0x1b   :  { %s48_s15 = sshll.u32 %s1319_s1, 4  ;;  %s49_s15 = int_to_ptr.vmem [resolvable:$true] %s48_s15 }
  0x1c   :  { %s1275_s16 = scalar_lea.vmem %s49_s15, 3072  ;;  %p1280_p11 = scmp.lt.s32.totalorder %s49_s15, %s49_s15 }
  0x1d   :  { %p1276_p10 = scmp.ne.s32.totalorder %s49_s15, %s1275_s16  ;;  %p1281_p12 = scmp.lt.s32.totalorder %s1275_s16, %s1275_s16 }
  0x1f   :  { %p1282_p13 = por %p1281_p12, %p1280_p11 }
  0x21   :  { %p1283_p0 = pnand %p1282_p13, %p1276_p10 }
  0x23   :  { %1286 = shalt.err (!%p1283_p0)
}
  0x24   :  { %54 = dma.hbm_to_vmem [thread:$0]  %s1591_s4, 3072, %s49_s15, [#allocation6], %s1314_s27, %s1314_s27, %s1315_s28  }
  0x25   :  { %1307 = dma.done.wait [#allocation3], 512  }
  0x26   :  { %1308 = vsyncadd [#allocation3], 4294966784 }
  0x27   :  { %1309 = dma.done.wait [#allocation6], 6144  }
  0x28   :  { %1310 = vsyncadd [#allocation6], 4294961152  ;;  %v1175_v0 = vld [vmem:[#allocation5 + $0x78] sm:$0xff]   ;;  %v1178_v3 = vld [vmem:[#allocation5 + $0x70] sm:$0xff]   ;;  %v73_v7 = vlaneseq  ;;  %vm1320_vm5 = vmmov 1   ;;  %s1321_s0 = smov 16  }
  0x29   :  { %v1176_v1 = vld [vmem:[#allocation5 + $0xb8] sm:$0xff]   ;;  %1048 = vmatprep.subr.bf16.mxu0 %v1175_v0  ;;  %v1179_v4 = vld [vmem:[#allocation5 + $0xb0] sm:$0xff]   ;;  %v1181_v6 = vld [vmem:[#allocation5 + $0x68] sm:$0xff]   ;;  %s1322_s4 = smov 32  }
  0x2a   :  { %v1177_v2 = vld [vmem:[#allocation5 + $0x38] sm:$0xff]   ;;  %1124 = vmatprep.subr.bf16.mxu1 %v1176_v1  ;;  %v1180_v5 = vld [vmem:[#allocation5 + $0x30] sm:$0xff]   ;;  %v1182_v8 = vld [vmem:[#allocation5 + $0xa8] sm:$0xff]   ;;  %v1380_v12 = vshrl.u32 %v73_v7, 7 }
  0x2b   :  { %1049 = vmatpush3.bf16.msra.mxu0 %v1177_v2  ;;  %1125 = vmatpush3.bf16.msra.mxu1 %v1176_v1  ;;  %v1183_v9 = vld [vmem:[#allocation5 + $0x28] sm:$0xff]   ;;  %v1184_v10 = vld [vmem:[#allocation5 + $0x60] sm:$0xff]   ;;  %v1187_v14 = vld [vmem:[#allocation5 + $0x58] sm:$0xff]  }
  0x2c   :  { %1050 = vmatprep.subr.bf16.mxu0 %v1178_v3  ;;  %1126 = vmatprep.subr.bf16.mxu1 %v1179_v4  ;;  %v1185_v11 = vld [vmem:[#allocation5 + $0xa0] sm:$0xff]   ;;  %v1188_v15 = vld [vmem:[#allocation5 + $0x98] sm:$0xff]   ;;  %v75_v16 = vadd.s32 8, %v1380_v12  ;;  %v1190_v18 = vld [vmem:[#allocation5 + $0x50] sm:$0xff]   ;;  %v77_v19 = vadd.s32 24, %v1380_v12  ;;  %v82_v22 = vand.u32 15, %v1380_v12 }
  0x2d   :  { %v1186_v13 = vld [vmem:[#allocation5 + $0x20] sm:$0xff]   ;;  %v1189_v17 = vld [vmem:[#allocation5 + $0x18] sm:$0xff]   ;;  %v1191_v20 = vld [vmem:[#allocation5 + $0x90] sm:$0xff]   ;;  %v76_v24 = vadd.s32 16, %v1380_v12  ;;  %vm151_vm0 = vcmp.lt.s32.totalorder %v1380_v12, 7  ;;  %vm138_vm2 = vcmp.lt.s32.totalorder %v1380_v12, 1 }
  0x2e   :  { %v89_v21 = vand.u32 15, %v75_v16  ;;  %v1192_v23 = vld [vmem:[#allocation5 + $0x10] sm:$0xff]   ;;  %v1193_v25 = vld [vmem:[#allocation5 + $0x48] sm:$0xff]   ;;  %v103_v26 = vand.u32 15, %v77_v19  ;;  %v1196_v30 = vld [vmem:[#allocation5 + $0x40] sm:$0xff]   ;;  %vm1398_vm3 = vcmp.ne.s32.totalorder %v82_v22, 0 }
  0x2f   :  { %1051 = vmatpush3.bf16.msra.mxu0 %v1180_v5  ;;  %1127 = vmatpush3.bf16.msra.mxu1 %v1179_v4  ;;  %v1194_v27 = vld [vmem:[#allocation5 + $0x88] sm:$0xff]   ;;  %v1197_v31 = vld [vmem:[#allocation5 + $0x80] sm:$0xff]   ;;  %v96_v32 = vand.u32 15, %v76_v24  ;;  %v1395_v35 = vld [vmem:[#allocation2 + $0x10] sm:$0xff] }
  0x30   :  { %1052 = vmatprep.subr.bf16.mxu0 %v1181_v6  ;;  %1128 = vmatprep.subr.bf16.mxu1 %v1182_v8  ;;  %v1195_v28 = vld [vmem:[#allocation5 + $0x8] sm:$0xff]   ;;  %vm1387_vm1 = vcmp.ne.s32.totalorder %v89_v21, 15  ;;  %v1391_v33 = vld [vmem:[#allocation2] sm:$0xff]  ;;  %vm1402_vm4 = vcmp.ne.s32.totalorder %v103_v26, 15  ;;  %v1411_v42 = vld [vmem:[#allocation2 + $0x18] sm:$0xff]  ;;  %v149_v45 = vrot.slane %v1395_v35, 1 }
  0x31   :  { %v1393_v34 = vld [vmem:[#allocation2 + $0x8] sm:$0xff]  ;;  %v134_v38 = vrot.slane %v1391_v33, 7  ;;  %v147_v41 = vrot.slane %v1391_v33, 1  ;;  %v1198_v43 = vld [vmem:[#allocation5] sm:$0xff]   ;;  %vm1418_vm6 = vmpackc.low %vm1387_vm1, %vm1320_vm5  ;;  %v137_v47 = vrot.slane %v1411_v42, 7  ;;  %v150_v48 = vrot.slane %v1411_v42, 1 }
  0x32   :  { %v135_v39 = vrot.slane %v1393_v34, 7  ;;  %v161_v40 = vpack.c.bf16 %v1393_v34, %v1391_v33  ;;  %v148_v44 = vrot.slane %v1393_v34, 1  ;;  %vm1429_vm7 = vmpackc.low %vm1320_vm5, %vm1398_vm3  ;;  %vm1433_vm8 = vcmp.ne.s32.totalorder %v96_v32, 0 }
  0x33   :  { %1053 = vmatpush3.bf16.msra.mxu0 %v1183_v9  ;;  %1129 = vmatpush3.bf16.msra.mxu1 %v1182_v8  ;;  %v142_v54 = vsel %vm138_vm2, %v137_v47, %v134_v38  ;;  %vm1446_vm9 = vmpackc.low %vm1402_vm4, %vm1320_vm5  ;;  %v136_v56 = vrot.slane %v1395_v35, 7  ;;  %v152_v58 = vsel %vm151_vm0, %v149_v45, %v150_v48  ;;  %v155_v59 = vsel %vm151_vm0, %v150_v48, %v147_v41 }
  0x34   :  { %1054 = vmatprep.subr.bf16.mxu0 %v1184_v10  ;;  %1130 = vmatprep.subr.bf16.mxu1 %v1185_v11  ;;  %v141_v49 = vsel %vm138_vm2, %v134_v38, %v135_v39  ;;  %v153_v52 = vsel %vm151_vm0, %v148_v44, %v149_v45  ;;  %v154_v53 = vsel %vm151_vm0, %v147_v41, %v148_v44  ;;  %vm1462_vm10 = vmpackc.low %vm1320_vm5, %vm1433_vm8 }
  0x35   :  { %390 = vmatprep.mubr.bf16.mxu0 %v161_v40  ;;  %v998_v57 = vpack.c.bf16 %v153_v52, %v154_v53  ;;  %v990_v60 = vpack.c.bf16 %v141_v49, %v142_v54  ;;  %v1002_v61 = vpack.c.bf16 %v155_v59, %v152_v58  ;;  %v164_v62 = vpack.c.bf16 %v1411_v42, %v1395_v35 }
  0x36   :  { %v139_v0 = vsel %vm138_vm2, %v136_v56, %v137_v47  ;;  %v140_v1 = vsel %vm138_vm2, %v135_v39, %v136_v56 }
  0x37   :  { %1055 = vmatpush3.bf16.msra.mxu0 %v1186_v13  ;;  %1131 = vmatpush3.bf16.msra.mxu1 %v1185_v11  ;;  %v994_v2 = vpack.c.bf16 %v139_v0, %v140_v1  ;;  %v1200_v0 = vld [vmem:[#allocation7 + $0x38] sm:$0xff]  }
  0x38   :  { %1056 = vmatprep.subr.bf16.mxu0 %v1187_v14  ;;  %1132 = vmatprep.subr.bf16.mxu1 %v1188_v15  ;;  %v1201_v1 = vld [vmem:[#allocation7 + $0xb8] sm:$0xff]  }
  0x39   :  { %1140 = vmatprep.mubr.msk.bf16.mxu1 %vm1418_vm6, %v998_v57 }
  0x3b   :  { %1057 = vmatpush3.bf16.msra.mxu0 %v1189_v17  ;;  %1133 = vmatpush3.bf16.msra.mxu1 %v1188_v15 }
  0x3c   :  { %1058 = vmatprep.subr.bf16.mxu0 %v1190_v18  ;;  %1134 = vmatprep.subr.bf16.mxu1 %v1191_v20 }
  0x3f   :  { %1059 = vmatpush3.bf16.msra.mxu0 %v1192_v23  ;;  %1135 = vmatpush3.bf16.msra.mxu1 %v1191_v20 }
  0x40   :  { %1060 = vmatprep.subr.bf16.mxu0 %v1193_v25  ;;  %1136 = vmatprep.subr.bf16.mxu1 %v1194_v27 }
  0x43   :  { %1061 = vmatpush3.bf16.msra.mxu0 %v1195_v28  ;;  %1137 = vmatpush3.bf16.msra.mxu1 %v1194_v27 }
  0x44   :  { %1062 = vmatprep.subr.bf16.mxu0 %v1196_v30  ;;  %1138 = vmatprep.subr.bf16.mxu1 %v1197_v31 }
  0x47   :  { %1063 = vmatpush3.bf16.msra.mxu0 %v1198_v43  ;;  %1139 = vmatpush3.bf16.msra.mxu1 %v1197_v31 }
  0x48   :  { %1144 = vmatprep.subr.bf16.mxu1 %v1201_v1 }
  0x4a   :  { %991 = vmatmul.mubr.msk.bf16.vlgmr.msra.gmra.mxu0 %vm1429_vm7, %v990_v60  ;;  %1141 = vmatmul.mubr.msk.bf16.vlgmr.msra.gmra.mxu1 %vm1446_vm9, %v1002_v61  ;;  %v1199_v61 = vld [vmem:[#allocation7 + $0x78] sm:$0xff]  }
  0x4b   :  { %398 = vmatprep.mubr.bf16.mxu0 %v164_v62  ;;  %1086 = vmatprep.subr.bf16.mxu0 %v1199_v61 }
  0x4c   :  { %1087 = vmatpush3.bf16.msra.mxu0 %v1200_v0  ;;  %1145 = vmatpush3.bf16.msra.mxu1 %v1201_v1 }
  0x52   :  { %995 = vmatmul.mubr.msk.bf16.gmra.mxu0 %vm1462_vm10, %v994_v2 }
 0x10a   :  { %v1064_v3 = vpop.f32.mrf.mxu0  ;;  %v1142_v4 = vpop.f32.mrf.mxu1 }
 0x10c   :  { %v1065_v5 = vpop.f32.mrf.mxu0  ;;  %v441_v6 = vpop.f32.mrf.mxu1 }
 0x10d   :  { %v1066_v10 = vadd.f32 %v1065_v5, %v1064_v3  ;;  %v1202_v3 = vld [vmem:[#allocation7 + $0x70] sm:$0xff]  }
 0x10e   :  { %v1067_v7 = vpop.f32.mrf.mxu0  ;;  %v1143_v8 = vpop.f32.mrf.mxu1  ;;  %v1203_v5 = vld [vmem:[#allocation7 + $0x30] sm:$0xff]   ;;  %1088 = vmatprep.subr.bf16.mxu0 %v1202_v3 }
 0x10f   :  { %v1478_v17 = vadd.f32 %v1066_v10, %v441_v6  ;;  %v1204_v6 = vld [vmem:[#allocation7 + $0xb0] sm:$0xff]   ;;  %1089 = vmatpush3.bf16.msra.mxu0 %v1203_v5  ;;  %v1207_v10 = vld [vmem:[#allocation7 + $0xa8] sm:$0xff]  }
 0x110   :  { %v1068_v9 = vpop.f32.mrf.mxu0  ;;  %v444_v13 = vpop.f32.mrf.mxu1  ;;  %1146 = vmatprep.subr.bf16.mxu1 %v1204_v6 }
 0x111   :  { %v1069_v11 = vadd.f32 %v1068_v9, %v1067_v7  ;;  %v467_v23 = vmul.f32 %v1478_v17, %v1478_v17  ;;  %1147 = vmatpush3.bf16.msra.mxu1 %v1204_v6  ;;  %v1206_v9 = vld [vmem:[#allocation7 + $0x28] sm:$0xff]  }
 0x112   :  { %v1070_v14 = vpop.f32.mrf.mxu0  ;;  %1148 = vmatprep.subr.bf16.mxu1 %v1207_v10 }
 0x113   :  { %v1476_v15 = vadd.f32 %v1069_v11, %v444_v13  ;;  %v1208_v11 = vld [vmem:[#allocation7 + $0x60] sm:$0xff]  }
 0x114   :  { %v1071_v16 = vpop.f32.mrf.mxu0  ;;  %v1209_v13 = vld [vmem:[#allocation7 + $0x20] sm:$0xff]  }
 0x115   :  { %v1072_v18 = vadd.f32 %v1071_v16, %v1070_v14  ;;  %v468_v20 = vmul.f32 %v1476_v15, %v1476_v15  ;;  %v458_v24 = vadd.f32 %v1476_v15, %v1478_v17  ;;  %1149 = vmatpush3.bf16.msra.mxu1 %v1207_v10  ;;  %v1210_v14 = vld [vmem:[#allocation7 + $0xa0] sm:$0xff]   ;;  %v1211_v16 = vld [vmem:[#allocation7 + $0x58] sm:$0xff]  }
 0x116   :  { %v1073_v19 = vpop.f32.mrf.mxu0  ;;  %1150 = vmatprep.subr.bf16.mxu1 %v1210_v14 }
 0x117   :  { %v1482_v21 = vadd.f32 %v1142_v4, %v1072_v18  ;;  %v471_v27 = vadd.f32 %v468_v20, %v467_v23  ;;  %v1212_v18 = vld [vmem:[#allocation7 + $0x18] sm:$0xff]   ;;  %v1214_v20 = vld [vmem:[#allocation7 + $0x50] sm:$0xff]  }
 0x118   :  { %v1074_v22 = vpop.f32.mrf.mxu0  ;;  %v1216_v23 = vld [vmem:[#allocation7 + $0x90] sm:$0xff]  }
 0x119   :  { %v469_v25 = vmul.f32 %v1482_v21, %v1482_v21  ;;  %v1075_v26 = vadd.f32 %v1074_v22, %v1073_v19  ;;  %v459_v28 = vadd.f32 %v458_v24, %v1482_v21  ;;  %1151 = vmatpush3.bf16.msra.mxu1 %v1210_v14  ;;  %v1213_v19 = vld [vmem:[#allocation7 + $0x98] sm:$0xff]   ;;  %v1215_v22 = vld [vmem:[#allocation7 + $0x10] sm:$0xff]   ;;  %v1217_v24 = vld [vmem:[#allocation7 + $0x48] sm:$0xff]  }
 0x11a   :  { %1152 = vmatprep.subr.bf16.mxu1 %v1213_v19 }
 0x11b   :  { %v1491_v29 = vadd.f32 %v1143_v8, %v1075_v26  ;;  %v472_v30 = vadd.f32 %v471_v27, %v469_v25  ;;  %v1205_v8 = vld [vmem:[#allocation7 + $0x68] sm:$0xff]   ;;  %v1220_v27 = vld [vmem:[#allocation7 + $0x40] sm:$0xff]  }
 0x11c   :  { %1090 = vmatprep.subr.bf16.mxu0 %v1205_v8  ;;  %v1219_v25 = vld [vmem:[#allocation7 + $0x88] sm:$0xff]  }
 0x11d   :  { %v460_v31 = vadd.f32 %v459_v28, %v1491_v29  ;;  %v470_v32 = vmul.f32 %v1491_v29, %v1491_v29  ;;  %1091 = vmatpush3.bf16.msra.mxu0 %v1206_v9  ;;  %1153 = vmatpush3.bf16.msra.mxu1 %v1213_v19  ;;  %v1218_v26 = vld [vmem:[#allocation7 + $0x8] sm:$0xff]   ;;  %v1221_v28 = vld [vmem:[#allocation7] sm:$0xff]  }
 0x11e   :  { %1092 = vmatprep.subr.bf16.mxu0 %v1208_v11  ;;  %1154 = vmatprep.subr.bf16.mxu1 %v1216_v23 }
 0x11f   :  { %v461_v36 = vrot.slane %v460_v31, 4  ;;  %v473_v37 = vadd.f32 %v472_v30, %v470_v32  ;;  %v1222_v30 = vld [vmem:[#allocation7 + $0x80] sm:$0xff]  }
 0x121   :  { %v462_v38 = vadd.f32 %v461_v36, %v460_v31  ;;  %v474_v39 = vrot.slane %v473_v37, 4  ;;  %1093 = vmatpush3.bf16.msra.mxu0 %v1209_v13  ;;  %1155 = vmatpush3.bf16.msra.mxu1 %v1216_v23 }
 0x122   :  { %1094 = vmatprep.subr.bf16.mxu0 %v1211_v16  ;;  %1156 = vmatprep.subr.bf16.mxu1 %v1219_v25 }
 0x123   :  { %v463_v40 = vrot.slane %v462_v38, 2  ;;  %v475_v41 = vadd.f32 %v474_v39, %v473_v37 }
 0x125   :  { %v464_v43 = vadd.f32 %v463_v40, %v462_v38  ;;  %v476_v44 = vrot.slane %v475_v41, 2  ;;  %1095 = vmatpush3.bf16.msra.mxu0 %v1212_v18  ;;  %1157 = vmatpush3.bf16.msra.mxu1 %v1219_v25 }
 0x126   :  { %1096 = vmatprep.subr.bf16.mxu0 %v1214_v20  ;;  %1158 = vmatprep.subr.bf16.mxu1 %v1222_v30 }
 0x127   :  { %v465_v45 = vrot.slane %v464_v43, 1  ;;  %v477_v47 = vadd.f32 %v476_v44, %v475_v41  ;;  %v456_v44 = vld [vmem:[%s1589_s2] sm:$0x1] }
 0x129   :  { %v466_v48 = vadd.f32 %v465_v45, %v464_v43  ;;  %v478_v49 = vrot.slane %v477_v47, 1  ;;  %1097 = vmatpush3.bf16.msra.mxu0 %v1215_v22  ;;  %1159 = vmatpush3.bf16.msra.mxu1 %v1222_v30  ;;  %v1508_v45 = vsub.s32 0, %v1380_v12 }
 0x12a   :  { %1098 = vmatprep.subr.bf16.mxu0 %v1217_v24 }
 0x12b   :  { %480 = vrot.lane.b32.xlu0 %v466_v48, %s1318_s12  ;;  %v479_v51 = vadd.f32 %v478_v49, %v477_v47  ;;  %v457_v49 = vld [vmem:[%s1590_s3] sm:$0x1] }
 0x12d   :  { %1099 = vmatpush3.bf16.msra.mxu0 %v1218_v26 }
 0x12e   :  { %1100 = vmatprep.subr.bf16.mxu0 %v1220_v27 }
 0x12f   :  { %483 = vrot.lane.b32.xlu0 %v479_v51, %s1318_s12 }
 0x131   :  { %1101 = vmatpush3.bf16.msra.mxu0 %v1221_v28 }
 0x19d   :  { %v481_v52 = vpop.permute.xlu0 %480 }
 0x19e   :  { %v482_v53 = vadd.f32 %v481_v52, %v466_v48 }
 0x1a0   :  { %486 = vrot.lane.b32.xlu1 %v482_v53, %s1321_s0 }
 0x1a1   :  { %v484_v54 = vpop.permute.xlu0 %483 }
 0x1a2   :  { %v485_v56 = vadd.f32 %v484_v54, %v479_v51 }
 0x1a4   :  { %489 = vrot.lane.b32.xlu1 %v485_v56, %s1321_s0 }
 0x212   :  { %v487_v57 = vpop.permute.xlu1 %486 }
 0x213   :  { %v488_v58 = vadd.f32 %v487_v57, %v482_v53 }
 0x215   :  { %492 = vrot.lane.b32.xlu0 %v488_v58, %s1322_s4 }
 0x216   :  { %v490_v59 = vpop.permute.xlu1 %489 }
 0x217   :  { %v491_v60 = vadd.f32 %v490_v59, %v485_v56 }
 0x219   :  { %495 = vrot.lane.b32.xlu1 %v491_v60, %s1322_s4 }
 0x287   :  { %v493_v62 = vpop.permute.xlu0 %492 }
 0x288   :  { %v494_v2 = vadd.f32 %v493_v62, %v488_v58 }
 0x28a   :  { %498 = vrot.lane.b32.xlu0 %v494_v2, %s1314_s27 }
 0x28b   :  { %v496_v4 = vpop.permute.xlu1 %495 }
 0x28c   :  { %v497_v7 = vadd.f32 %v496_v4, %v491_v60 }
 0x28e   :  { %501 = vrot.lane.b32.xlu1 %v497_v7, %s1314_s27 }
 0x2fc   :  { %v499_v31 = vpop.permute.xlu0 %498 }
 0x2fd   :  { %v500_v32 = vadd.f32 %v499_v31, %v494_v2 }
 0x2ff   :  { %v504_v36 = vmul.f32 0.001953125, %v500_v32 }
 0x300   :  { %v502_v37 = vpop.permute.xlu1 %501 }
 0x301   :  { %v503_v38 = vadd.f32 %v502_v37, %v497_v7  ;;  %v506_v39 = vmul.f32 %v504_v36, %v504_v36 }
 0x303   :  { %v505_v40 = vmul.f32 0.001953125, %v503_v38 }
 0x305   :  { %v507_v41 = vsub.f32 %v505_v40, %v506_v39 }
 0x307   :  { %v508_v43 = vadd.f32 1e-05, %v507_v41 }
 0x309   :  { %1223 = vrsqrt.f32 %v508_v43 }
 0x316   :  { %v1224_v47 = vpop.eup %1223 }
 0x317   :  { %v510_v48 = vmul.f32 %v1224_v47, %v456_v44 }
 0x319   :  { %v511_v51 = vmul.f32 %v510_v48, %v504_v36  ;;  %v517_v52 = vrot.slane %v510_v48, %v1508_v45 }
 0x31b   :  { %v512_v53 = vsub.f32 %v457_v49, %v511_v51  ;;  %v519_v54 = vmul.f32 %v517_v52, %v1478_v17  ;;  %v520_v56 = vmul.f32 %v517_v52, %v1476_v15  ;;  %v522_v57 = vmul.f32 %v517_v52, %v1491_v29 }
 0x31c   :  { %v521_v59 = vmul.f32 %v517_v52, %v1482_v21 }
 0x31d   :  { %v527_v58 = vrot.slane %v512_v53, %v1508_v45 }
 0x31f   :  { %v529_v60 = vadd.f32 %v527_v58, %v519_v54  ;;  %v530_v61 = vadd.f32 %v527_v58, %v520_v56  ;;  %v532_v62 = vadd.f32 %v527_v58, %v522_v57  ;;  %v531_v0 = vadd.f32 %v527_v58, %v521_v59 }
 0x321   :  { %v533_v1 = vmax.f32 %v529_v60, 0.0  ;;  %v534_v2 = vmax.f32 %v530_v61, 0.0  ;;  %v536_v3 = vmax.f32 %v532_v62, 0.0  ;;  %v535_v4 = vmax.f32 %v531_v0, 0.0 }
 0x323   :  { %v537_v5 = vrot.slane %v533_v1, 7  ;;  %v538_v6 = vrot.slane %v534_v2, 7  ;;  %v540_v7 = vrot.slane %v536_v3, 7  ;;  %v562_v17 = vpack.c.bf16 %v534_v2, %v533_v1 }
 0x324   :  { %v549_v8 = vrot.slane %v533_v1, 1  ;;  %v550_v15 = vrot.slane %v534_v2, 1  ;;  %v551_v9 = vrot.slane %v535_v4, 1  ;;  %v552_v10 = vrot.slane %v536_v3, 1 }
 0x325   :  { %v543_v29 = vsel %vm138_vm2, %v537_v5, %v538_v6  ;;  %v544_v21 = vsel %vm138_vm2, %v540_v7, %v537_v5  ;;  %791 = vmatprep.mubr.bf16.mxu0 %v562_v17  ;;  %v565_v16 = vpack.c.bf16 %v536_v3, %v535_v4  ;;  %v539_v22 = vrot.slane %v535_v4, 7 }
 0x326   :  { %v1030_v11 = vpack.c.bf16 %v543_v29, %v544_v21  ;;  %v554_v13 = vsel %vm151_vm0, %v550_v15, %v551_v9  ;;  %v555_v14 = vsel %vm151_vm0, %v549_v8, %v550_v15  ;;  %v553_v19 = vsel %vm151_vm0, %v551_v9, %v552_v10 }
 0x327   :  { %v1038_v18 = vpack.c.bf16 %v554_v13, %v555_v14  ;;  %v556_v20 = vsel %vm151_vm0, %v552_v10, %v549_v8  ;;  %v541_v24 = vsel %vm138_vm2, %v539_v22, %v540_v7  ;;  %v542_v25 = vsel %vm138_vm2, %v538_v6, %v539_v22 }
 0x328   :  { %1031 = vmatmul.mubr.msk.bf16.vlgmr.msra.gmra.mxu0 %vm1429_vm7, %v1030_v11  ;;  %v1042_v23 = vpack.c.bf16 %v556_v20, %v553_v19  ;;  %v1034_v26 = vpack.c.bf16 %v541_v24, %v542_v25 }
 0x329   :  { %1160 = vmatprep.mubr.msk.bf16.mxu1 %vm1418_vm6, %v1038_v18  ;;  %799 = vmatprep.mubr.bf16.mxu0 %v565_v16 }
 0x32a   :  { %1161 = vmatmul.mubr.msk.bf16.vlgmr.msra.gmra.mxu1 %vm1446_vm9, %v1042_v23 }
 0x330   :  { %1035 = vmatmul.mubr.msk.bf16.gmra.mxu0 %vm1462_vm10, %v1034_v26 }
 0x3e8   :  { %v1102_v50 = vpop.f32.mrf.mxu0 }
 0x3ea   :  { %v1162_v27 = vpop.f32.mrf.mxu1  ;;  %v1103_v28 = vpop.f32.mrf.mxu0 }
 0x3eb   :  { %v1104_v36 = vadd.f32 %v1103_v28, %v1102_v50 }
 0x3ec   :  { %v842_v30 = vpop.f32.mrf.mxu1  ;;  %v1105_v46 = vpop.f32.mrf.mxu0 }
 0x3ed   :  { %v1545_v12 = vadd.f32 %v1104_v36, %v842_v30  ;;  %v858_v36 = vld [vmem:[%s1593_s6] sm:$0x1] }
 0x3ee   :  { %v1163_v31 = vpop.f32.mrf.mxu1  ;;  %v1106_v32 = vpop.f32.mrf.mxu0 }
 0x3ef   :  { %v1107_v55 = vadd.f32 %v1106_v32, %v1105_v46  ;;  %v868_v48 = vmul.f32 %v1545_v12, %v1545_v12  ;;  %v857_v46 = vld [vmem:[%s1592_s5] sm:$0x1]  ;;  %s1323_s5 = smov [#allocation8]  }
 0x3f0   :  { %v845_v37 = vpop.f32.mrf.mxu1  ;;  %v1108_v38 = vpop.f32.mrf.mxu0  ;;  %s951_s25 = sshll.u32 %s1323_s5, 4  ;;  %s952_s25 = int_to_ptr.vmem [resolvable:$true] %s951_s25 }
 0x3f1   :  { %v1543_v39 = vadd.f32 %v1107_v55, %v845_v37  ;;  %s1287_s6 = scalar_lea.vmem %s952_s25, 512  ;;  %p1292_p2 = scmp.lt.s32.totalorder %s952_s25, %s952_s25 }
 0x3f2   :  { %v1109_v40 = vpop.f32.mrf.mxu0  ;;  %p1288_p1 = scmp.ne.s32.totalorder %s952_s25, %s1287_s6  ;;  %p1293_p3 = scmp.lt.s32.totalorder %s1287_s6, %s1287_s6 }
 0x3f3   :  { %v1110_v41 = vadd.f32 %v1109_v40, %v1108_v38  ;;  %v869_v63 = vmul.f32 %v1543_v39, %v1543_v39  ;;  %v859_v49 = vadd.f32 %v1543_v39, %v1545_v12 }
 0x3f4   :  { %v1111_v43 = vpop.f32.mrf.mxu0  ;;  %p1294_p4 = por %p1293_p3, %p1292_p2 }
 0x3f5   :  { %v1549_v44 = vadd.f32 %v1162_v27, %v1110_v41  ;;  %v872_v53 = vadd.f32 %v869_v63, %v868_v48 }
 0x3f6   :  { %v1112_v47 = vpop.f32.mrf.mxu0  ;;  %p1295_p5 = pnand %p1294_p4, %p1288_p1 }
 0x3f7   :  { %v870_v51 = vmul.f32 %v1549_v44, %v1549_v44  ;;  %v1113_v52 = vadd.f32 %v1112_v47, %v1111_v43  ;;  %v860_v54 = vadd.f32 %v859_v49, %v1549_v44 }
 0x3f9   :  { %v854_v56 = vadd.f32 %v1163_v31, %v1113_v52  ;;  %v873_v57 = vadd.f32 %v872_v53, %v870_v51 }
 0x3fb   :  { %v861_v58 = vadd.f32 %v860_v54, %v854_v56  ;;  %v871_v59 = vmul.f32 %v854_v56, %v854_v56 }
 0x3fd   :  { %v862_v60 = vrot.slane %v861_v58, 4  ;;  %v874_v61 = vadd.f32 %v873_v57, %v871_v59 }
 0x3ff   :  { %v863_v62 = vadd.f32 %v862_v60, %v861_v58  ;;  %v875_v0 = vrot.slane %v874_v61, 4 }
 0x401   :  { %v864_v1 = vrot.slane %v863_v62, 2  ;;  %v876_v2 = vadd.f32 %v875_v0, %v874_v61 }
 0x403   :  { %v865_v3 = vadd.f32 %v864_v1, %v863_v62  ;;  %v877_v4 = vrot.slane %v876_v2, 2 }
 0x405   :  { %v866_v5 = vrot.slane %v865_v3, 1  ;;  %v878_v6 = vadd.f32 %v877_v4, %v876_v2 }
 0x407   :  { %v867_v7 = vadd.f32 %v866_v5, %v865_v3  ;;  %v879_v17 = vrot.slane %v878_v6, 1 }
 0x409   :  { %881 = vrot.lane.b32.xlu0 %v867_v7, %s1318_s12  ;;  %v880_v8 = vadd.f32 %v879_v17, %v878_v6 }
 0x40b   :  { %884 = vrot.lane.b32.xlu1 %v880_v8, %s1318_s12 }
 0x47b   :  { %v882_v15 = vpop.permute.xlu0 %881 }
 0x47c   :  { %v883_v9 = vadd.f32 %v882_v15, %v867_v7 }
 0x47d   :  { %v885_v29 = vpop.permute.xlu1 %884 }
 0x47e   :  { %v886_v21 = vadd.f32 %v885_v29, %v880_v8  ;;  %887 = vrot.lane.b32.xlu0 %v883_v9, %s1321_s0 }
 0x480   :  { %890 = vrot.lane.b32.xlu1 %v886_v21, %s1321_s0 }
 0x4f0   :  { %v888_v10 = vpop.permute.xlu0 %887 }
 0x4f1   :  { %v889_v11 = vadd.f32 %v888_v10, %v883_v9 }
 0x4f2   :  { %v891_v13 = vpop.permute.xlu1 %890 }
 0x4f3   :  { %v892_v14 = vadd.f32 %v891_v13, %v886_v21  ;;  %893 = vrot.lane.b32.xlu0 %v889_v11, %s1322_s4 }
 0x4f5   :  { %896 = vrot.lane.b32.xlu1 %v892_v14, %s1322_s4 }
 0x565   :  { %v894_v16 = vpop.permute.xlu0 %893 }
 0x566   :  { %v895_v18 = vadd.f32 %v894_v16, %v889_v11 }
 0x567   :  { %v897_v19 = vpop.permute.xlu1 %896 }
 0x568   :  { %v898_v20 = vadd.f32 %v897_v19, %v892_v14  ;;  %899 = vrot.lane.b32.xlu0 %v895_v18, %s1314_s27 }
 0x56a   :  { %902 = vrot.lane.b32.xlu1 %v898_v20, %s1314_s27 }
 0x5da   :  { %v900_v22 = vpop.permute.xlu0 %899 }
 0x5db   :  { %v901_v23 = vadd.f32 %v900_v22, %v895_v18 }
 0x5dc   :  { %v903_v24 = vpop.permute.xlu1 %902 }
 0x5dd   :  { %v905_v25 = vmul.f32 0.001953125, %v901_v23  ;;  %v904_v26 = vadd.f32 %v903_v24, %v898_v20 }
 0x5df   :  { %v907_v50 = vmul.f32 %v905_v25, %v905_v25  ;;  %v906_v27 = vmul.f32 0.001953125, %v904_v26 }
 0x5e1   :  { %v908_v28 = vsub.f32 %v906_v27, %v907_v50 }
 0x5e3   :  { %v909_v30 = vadd.f32 1e-05, %v908_v28 }
 0x5e5   :  { %1225 = vrsqrt.f32 %v909_v30 }
 0x5f2   :  { %v1226_v31 = vpop.eup %1225 }
 0x5f3   :  { %v911_v32 = vmul.f32 %v1226_v31, %v857_v46 }
 0x5f5   :  { %v912_v55 = vmul.f32 %v911_v32, %v905_v25  ;;  %v918_v37 = vrot.slane %v911_v32, %v1508_v45 }
 0x5f7   :  { %v913_v38 = vsub.f32 %v858_v36, %v912_v55  ;;  %v920_v40 = vmul.f32 %v918_v37, %v1545_v12  ;;  %v921_v41 = vmul.f32 %v918_v37, %v1543_v39  ;;  %v922_v43 = vmul.f32 %v918_v37, %v1549_v44 }
 0x5f8   :  { %v923_v63 = vmul.f32 %v918_v37, %v854_v56 }
 0x5f9   :  { %v928_v47 = vrot.slane %v913_v38, %v1508_v45 }
 0x5fb   :  { %v930_v48 = vadd.f32 %v928_v47, %v920_v40  ;;  %v931_v49 = vadd.f32 %v928_v47, %v921_v41  ;;  %v932_v51 = vadd.f32 %v928_v47, %v922_v43  ;;  %v933_v52 = vadd.f32 %v928_v47, %v923_v63 }
 0x5fd   :  { %v934_v53 = vadd.f32 %v930_v48, %v1391_v33  ;;  %v935_v54 = vadd.f32 %v931_v49, %v1393_v34  ;;  %v936_v57 = vadd.f32 %v932_v51, %v1395_v35  ;;  %v937_v12 = vadd.f32 %v933_v52, %v1411_v42 }
 0x5ff   :  { %v938_v39 = vmax.f32 %v934_v53, 0.0  ;;  %v939_v58 = vmax.f32 %v935_v54, 0.0  ;;  %v940_v44 = vmax.f32 %v936_v57, 0.0  ;;  %v941_v56 = vmax.f32 %v937_v12, 0.0 }
 0x601   :  { %942 = vst [vmem:[#allocation8] sm:$0xff] %v938_v39  ;;  %943 = vst [vmem:[#allocation8 + $0x8] sm:$0xff] %v939_v58 }
 0x602   :  { %944 = vst [vmem:[#allocation8 + $0x10] sm:$0xff] %v940_v44  ;;  %945 = vst [vmem:[#allocation8 + $0x18] sm:$0xff] %v941_v56 }
 0x603   :  { %1298 = shalt.err (!%p1295_p5)
}
 0x604   :  { %957 = dma.vmem_to_hbm [thread:$0]  %s952_s25, 512, %s1594_s7, [#allocation4], %s1317_s11, %s1317_s11, %s1318_s12  }
 0x605   :  { %1311 = dma.done.wait [#allocation4], 512  }
 0x606   :  { %1312 = vsyncadd [#allocation4], 4294966784 }
 0x607   :  { %961 = vsyncpa [#allocation3], 1 }
 0x608   :  { %962 = vsyncpa [#allocation6], 1 }
 0x609   :  { %963 = vsyncpa [#allocation4], 1 }

</bundles_post_ra>
